<compile_context>
chip_gen: v7x
topology: tpu7x:2x2x1
jax: 0.10.0
libtpu: 0.0.40
codegen_flags: <defaults>
</compile_context>

<pallas_src>
import jax
import jax.numpy as jnp
from jax.experimental import pallas as pl
from jax.experimental.pallas import tpu as pltpu

# TODO(synk): EfficientNet3D.from_name('efficientnet-b0', in_channels=1) is an
# external 3D-conv backbone (efficientnet_pytorch_3d) whose code is not part of
# this module; it is not translated here.  The Pallas kernel implements the
# classifier head on the backbone's 1000-d feature output.

NUM_FEATURES = 1000   # EfficientNet-b0 head output dim
NUM_CLASSES = 10

F_PAD = 1024          # 1000 -> multiple of 128 (K dim of the dot)
N_PAD = 128           # 10   -> one full lane group (output dim)


def _head_kernel(x_ref, wt_ref, b_ref, o_ref):
    """Fused SiLU -> (eval) dropout -> Linear on a single VMEM-resident tile."""
    x = x_ref[...]                               # [B, F_PAD] f32
    s = x * jax.nn.sigmoid(x)                    # SiLU kept in f32 (v5e EUP is f32-only)
    # nn.Dropout(p=0.2) in eval mode is the identity (no scaling); training-mode
    # dropout would need pltpu.prng_random_bits and is intentionally omitted.
    o_ref[...] = (
        jnp.dot(s.astype(jnp.bfloat16), wt_ref[...],      # bf16 x bf16 on the MXU
                preferred_element_type=jnp.float32)       # f32 accumulate
        + b_ref[...]
    )


def prepare_params(weight, bias):
    """One-time prep: transpose + zero-pad the classifier to TPU tile shapes.

    weight: [10, 1000] f32 -> [1024, 128] bf16  (halves the dominant weight DMA)
    bias:   [10]       f32 -> [1, 128]    f32
    Zero padding is exact: SiLU(0)=0 and padded weight rows/cols are zero.
    """
    wt_p = jnp.zeros((F_PAD, N_PAD), jnp.float32).at[
        :NUM_FEATURES, :NUM_CLASSES].set(weight.T.astype(jnp.float32))
    wt_p = wt_p.astype(jnp.bfloat16)
    b_p = jnp.zeros((1, N_PAD), jnp.float32).at[0, :NUM_CLASSES].set(
        bias.astype(jnp.float32))
    return wt_p, b_p


@jax.jit
def base_model_head(features, wt_p, b_p):
    """features: [B, 1000] f32; wt_p: [1024, 128] bf16; b_p: [1, 128] f32 -> [B, 10]."""
    B = features.shape[0]
    # Single lane-dim pad only; batch dim stays as-is (full-array block below).
    x_p = jnp.pad(features.astype(jnp.float32),
                  ((0, 0), (0, F_PAD - NUM_FEATURES)))

    # NOTE: for large B on v7x, the batch dim should become a 'parallel' grid
    # axis (weight index_map pinned to (0,0)) to use both TensorCores; at the
    # small batches used here a single invocation is optimal.
    out_p = pl.pallas_call(
        _head_kernel,
        out_shape=jax.ShapeDtypeStruct((B, N_PAD), jnp.float32),
        grid=(1,),
        in_specs=[
            # block_shape == full array shape -> exempt from (8,128) rule,
            # so B need not be padded to a multiple of 8.
            pl.BlockSpec((B, F_PAD), lambda i: (0, 0)),
            pl.BlockSpec((F_PAD, N_PAD), lambda i: (0, 0)),   # resident bf16 weight
            pl.BlockSpec((1, N_PAD), lambda i: (0, 0)),
        ],
        out_specs=pl.BlockSpec((B, N_PAD), lambda i: (0, 0)),
        compiler_params=pltpu.CompilerParams(
            dimension_semantics=("arbitrary",)),
    )(x_p, wt_p, b_p)

    return out_p[:, :NUM_CLASSES]


def init_params(key):
    """Deterministic parameter init matching BaseModel.__init__."""
    k_w, k_b = jax.random.split(key)
    # nn.init.xavier_normal_(classifier.weight): std = sqrt(2 / (fan_in + fan_out))
    std = (2.0 / (NUM_FEATURES + NUM_CLASSES)) ** 0.5
    weight = std * jax.random.normal(k_w, (NUM_CLASSES, NUM_FEATURES), jnp.float32)
    # nn.Linear default bias init: U(-1/sqrt(fan_in), 1/sqrt(fan_in))
    bound = 1.0 / (NUM_FEATURES ** 0.5)
    bias = jax.random.uniform(k_b, (NUM_CLASSES,), jnp.float32, -bound, bound)
    return weight, bias


def reference_head(features, weight, bias):
    s = features * jax.nn.sigmoid(features)
    return s @ weight.T + bias


if __name__ == "__main__":
    key = jax.random.PRNGKey(0)
    k_params, k_feat = jax.random.split(key)

    weight, bias = init_params(k_params)
    wt_p, b_p = prepare_params(weight, bias)   # one-time, hoisted out of the call path

    # Stand-in for backbone output: [batch=2, 1000] feature vector.
    B = 2
    features = jax.random.normal(k_feat, (B, NUM_FEATURES), jnp.float32)

    out = base_model_head(features, wt_p, b_p)
    out = jax.block_until_ready(out)

    ref = reference_head(features, weight, bias)
    assert out.shape == (B, NUM_CLASSES), out.shape
    # Relaxed tolerance: weight is stored/multiplied in bf16 (f32 accumulate).
    max_err = float(jnp.max(jnp.abs(out - ref)))
    assert max_err < 5e-2, max_err

    print("KERNEL_OK")
</pallas_src>

<mosaic_0001>
module attributes {stable_mosaic.version = 11 : i64} {
  func.func @_head_kernel(%arg0: i32, %arg1: memref<2x1024xf32, #tpu.memory_space<vmem>>, %arg2: memref<1024x128xbf16, #tpu.memory_space<vmem>>, %arg3: memref<1x128xf32, #tpu.memory_space<vmem>>, %arg4: memref<2x128xf32, #tpu.memory_space<vmem>>) attributes {dimension_semantics = [#tpu.dimension_semantics<arbitrary>], iteration_bounds = array<i64: 1>, scalar_prefetch = 0 : i64, scratch_operands = 0 : i64, tpu.core_type = #tpu.core_type<tc>, window_params = [{pipeline_mode = #tpu.pipeline_mode<synchronous>, transform_indices = @transform_0, window_bounds = array<i64: 2, 1024>}, {pipeline_mode = #tpu.pipeline_mode<synchronous>, transform_indices = @transform_1, window_bounds = array<i64: 1024, 128>}, {pipeline_mode = #tpu.pipeline_mode<synchronous>, transform_indices = @transform_2, window_bounds = array<i64: 1, 128>}, {pipeline_mode = #tpu.pipeline_mode<synchronous>, transform_indices = @transform_3, window_bounds = array<i64: 2, 128>}]} {
    %c0 = arith.constant 0 : index
    %c0_0 = arith.constant 0 : index
    %0 = vector.load %arg1[%c0, %c0_0] : memref<2x1024xf32, #tpu.memory_space<vmem>>, vector<2x1024xf32>
    %1 = arith.negf %0 : vector<2x1024xf32>
    %2 = math.exp %1 : vector<2x1024xf32>
    %cst = arith.constant 1.000000e+00 : f32
    %3 = vector.broadcast %cst : f32 to vector<2x1024xf32>
    %4 = arith.addf %3, %2 : vector<2x1024xf32>
    %5 = arith.divf %3, %4 : vector<2x1024xf32>
    %6 = arith.mulf %0, %5 : vector<2x1024xf32>
    %7 = arith.truncf %6 : vector<2x1024xf32> to vector<2x1024xbf16>
    %c0_1 = arith.constant 0 : index
    %c0_2 = arith.constant 0 : index
    %8 = vector.load %arg2[%c0_1, %c0_2] : memref<1024x128xbf16, #tpu.memory_space<vmem>>, vector<1024x128xbf16>
    %cst_3 = arith.constant dense<0.000000e+00> : vector<2x128xf32>
    %9 = tpu.matmul %7, %8, %cst_3 {dimension_numbers = #tpu.dot_dimension_numbers<[1], [0], [0], [1], [0, 0, 1, 1], [], []>} : vector<2x1024xbf16>, vector<1024x128xbf16>, vector<2x128xf32> -> vector<2x128xf32>
    %c0_4 = arith.constant 0 : index
    %c0_5 = arith.constant 0 : index
    %10 = vector.load %arg3[%c0_4, %c0_5] : memref<1x128xf32, #tpu.memory_space<vmem>>, vector<1x128xf32>
    %11 = vector.broadcast %10 : vector<1x128xf32> to vector<2x128xf32>
    %12 = arith.addf %9, %11 : vector<2x128xf32>
    %c0_6 = arith.constant 0 : index
    %c0_7 = arith.constant 0 : index
    %13 = vector.load %arg4[%c0_6, %c0_7] : memref<2x128xf32, #tpu.memory_space<vmem>>, vector<2x128xf32>
    tpu.vector_store %arg4[%c0_6, %c0_7], %12 {strides = array<i32>} : memref<2x128xf32, #tpu.memory_space<vmem>>, vector<2x128xf32>,
    return
  }
  func.func @transform_0(%arg0: i32) -> (i32, i32) {
    %c0_i32 = arith.constant 0 : i32
    %c0_i32_0 = arith.constant 0 : i32
    %c0_i32_1 = arith.constant 0 : i32
    return %c0_i32, %c0_i32_0 : i32, i32
  }
  func.func @transform_1(%arg0: i32) -> (i32, i32) {
    %c0_i32 = arith.constant 0 : i32
    %c0_i32_0 = arith.constant 0 : i32
    %c0_i32_1 = arith.constant 0 : i32
    return %c0_i32, %c0_i32_0 : i32, i32
  }
  func.func @transform_2(%arg0: i32) -> (i32, i32) {
    %c0_i32 = arith.constant 0 : i32
    %c0_i32_0 = arith.constant 0 : i32
    %c0_i32_1 = arith.constant 0 : i32
    return %c0_i32, %c0_i32_0 : i32, i32
  }
  func.func @transform_3(%arg0: i32) -> (i32, i32) {
    %c0_i32 = arith.constant 0 : i32
    %c0_i32_0 = arith.constant 0 : i32
    %c0_i32_1 = arith.constant 0 : i32
    return %c0_i32, %c0_i32_0 : i32, i32
  }
}

</mosaic_0001>

<bundles_post_ra>
// kernel: base_model_head.1
= control target key start
LH: loop header
LB: loop body
LE: loop exit
PB: predicated region body
PF: predicated region fallthrough
CT: control target
= control target key end

     0   :  { %8 = vsyncpa [#allocation3], 0  ;;  %s1141_s0 = inlined_call_operand.vmem [shape: f32[2,1024], index: 0, kind: input, shape index: {}]   ;;  %s1142_s1 = inlined_call_operand.hbm [shape: bf16[1024,128], index: 1, kind: input, shape index: {}]   ;;  %s1143_s2 = inlined_call_operand.vmem [shape: f32[1,128], index: 2, kind: input, shape index: {}]   ;;  %s1144_s3 = inlined_call_operand.hbm [shape: f32[2,128], index: 3, kind: output, shape index: {}]  }
   0x1   :  { %9 = vsyncpa [#allocation4], 0  ;;  %s1073_s12 = smov [#allocation2]   ;;  %s1025_s16 = scalar_lea.hbm %s1142_s1, 8192 }
   0x2   :  { %s17_s13 = sshll.u32 %s1073_s12, 4  ;;  %p1026_p0 = scmp.ne.s32.totalorder %s1142_s1, %s1025_s16  ;;  %s18_s13 = int_to_ptr.vmem [resolvable:$true] %s17_s13 }
   0x3   :  { %p1029_p1 = scmp.lt.u32.totalorder %s1025_s16, %s1142_s1 }
   0x5   :  { %p1031_p2 = pnand %p1029_p1, %p1026_p0 }
   0x7   :  { %1034 = shalt.err (!%p1031_p2)
}
   0x8   :  { %s1035_s21 = scalar_lea.vmem %s18_s13, 8192  ;;  %p1040_p4 = scmp.lt.s32.totalorder %s18_s13, %s18_s13 }
   0x9   :  { %p1036_p3 = scmp.ne.s32.totalorder %s18_s13, %s1035_s21  ;;  %p1041_p5 = scmp.lt.s32.totalorder %s1035_s21, %s1035_s21 }
   0xb   :  { %p1042_p6 = por %p1041_p5, %p1040_p4 }
   0xd   :  { %p1043_p7 = pnand %p1042_p6, %p1036_p3 }
   0xf   :  { %1046 = shalt.err (!%p1043_p7)
}
  0x10   :  { %s1074_s22 = smov 64   ;;  %s1075_s23 = smov 4  }
  0x11   :  { %23 = dma.hbm_to_vmem [thread:$0]  %s1142_s1, 8192, %s18_s13, [#allocation3], %s1074_s22, %s1074_s22, %s1075_s23  }
  0x12   :  { %1069 = dma.done.wait [#allocation3], 8192  }
  0x13   :  { %1070 = vsyncadd [#allocation3], 4294959104  ;;  %v953_v0 = vld [vmem:[#allocation2 + $0x40] sm:$0xff]   ;;  %v957_v4 = vld [vmem:[#allocation2 + $0x48] sm:$0xff]   ;;  %v1076_v38 = vmov 1983009808   ;;  %v52_v40 = vlaneseq }
  0x14   :  { %v954_v1 = vld [vmem:[#allocation2] sm:$0xff]   ;;  %860 = vmatprep.subr.bf16.mxu0 %v953_v0  ;;  %v958_v5 = vld [vmem:[#allocation2 + $0x8] sm:$0xff]   ;;  %v961_v8 = vld [vmem:[#allocation2 + $0x50] sm:$0xff]   ;;  %v50_v39 = vunpack.c.l.s4 %v1076_v38  ;;  %s1077_s30 = smov [#allocation5]  }
  0x15   :  { %v955_v2 = vld [vmem:[#allocation2 + $0xc0] sm:$0xff]   ;;  %861 = vmatpush3.bf16.msra.mxu0 %v954_v1  ;;  %v959_v6 = vld [vmem:[#allocation2 + $0xc8] sm:$0xff]   ;;  %v962_v9 = vld [vmem:[#allocation2 + $0x10] sm:$0xff]   ;;  %v53_v42 = vshrl.u32 %v52_v40, 7 }
  0x16   :  { %v956_v3 = vld [vmem:[#allocation2 + $0x80] sm:$0xff]   ;;  %882 = vmatprep.subr.bf16.mxu1 %v955_v2  ;;  %862 = vmatprep.subr.bf16.mxu0 %v957_v4  ;;  %v960_v7 = vld [vmem:[#allocation2 + $0x88] sm:$0xff]   ;;  %v963_v10 = vld [vmem:[#allocation2 + $0xd0] sm:$0xff]   ;;  %v51_v41 = vunpack.c.0.s8 %v50_v39 }
  0x17   :  { %883 = vmatpush3.bf16.msra.mxu1 %v956_v3  ;;  %v964_v11 = vld [vmem:[#allocation2 + $0x90] sm:$0xff]   ;;  %v965_v12 = vld [vmem:[#allocation2 + $0x58] sm:$0xff]   ;;  %v969_v16 = vld [vmem:[#allocation2 + $0x60] sm:$0xff]  }
  0x18   :  { %884 = vmatprep.subr.bf16.mxu1 %v959_v6  ;;  %v966_v13 = vld [vmem:[#allocation2 + $0x18] sm:$0xff]   ;;  %v970_v17 = vld [vmem:[#allocation2 + $0x20] sm:$0xff]   ;;  %v973_v20 = vld [vmem:[#allocation2 + $0x68] sm:$0xff]   ;;  %v1113_v43 = vsub.s32 %v51_v41, %v53_v42 }
  0x19   :  { %863 = vmatpush3.bf16.msra.mxu0 %v958_v5  ;;  %v967_v14 = vld [vmem:[#allocation2 + $0xd8] sm:$0xff]   ;;  %v971_v18 = vld [vmem:[#allocation2 + $0xe0] sm:$0xff]   ;;  %v974_v21 = vld [vmem:[#allocation2 + $0x28] sm:$0xff]  }
  0x1a   :  { %864 = vmatprep.subr.bf16.mxu0 %v961_v8  ;;  %v968_v15 = vld [vmem:[#allocation2 + $0x98] sm:$0xff]   ;;  %v972_v19 = vld [vmem:[#allocation2 + $0xa0] sm:$0xff]   ;;  %v975_v22 = vld [vmem:[#allocation2 + $0xe8] sm:$0xff]  }
  0x1b   :  { %885 = vmatpush3.bf16.msra.mxu1 %v960_v7  ;;  %v976_v23 = vld [vmem:[#allocation2 + $0xa8] sm:$0xff]   ;;  %v977_v24 = vld [vmem:[#allocation2 + $0x70] sm:$0xff]   ;;  %v981_v28 = vld [vmem:[#allocation2 + $0x78] sm:$0xff]  }
  0x1c   :  { %886 = vmatprep.subr.bf16.mxu1 %v963_v10  ;;  %v978_v25 = vld [vmem:[#allocation2 + $0x30] sm:$0xff]   ;;  %v982_v29 = vld [vmem:[#allocation2 + $0x38] sm:$0xff]   ;;  %v985_v34 = vld [vmem:[#allocation2 + $0x140] sm:$0xff]  }
  0x1d   :  { %865 = vmatpush3.bf16.msra.mxu0 %v962_v9  ;;  %v979_v26 = vld [vmem:[#allocation2 + $0xf0] sm:$0xff]   ;;  %v983_v30 = vld [vmem:[#allocation2 + $0xf8] sm:$0xff]   ;;  %v987_v35 = vld [vmem:[#allocation2 + $0x1c0] sm:$0xff]  }
  0x1e   :  { %866 = vmatprep.subr.bf16.mxu0 %v965_v12  ;;  %v980_v27 = vld [vmem:[#allocation2 + $0xb0] sm:$0xff]   ;;  %v984_v31 = vld [vmem:[#allocation2 + $0xb8] sm:$0xff]   ;;  %v986_v54 = vld [vmem:[#allocation2 + $0x100] sm:$0xff]  }
  0x1f   :  { %887 = vmatpush3.bf16.msra.mxu1 %v964_v11  ;;  %v30_v32 = vld [vmem:[%s1141_s0] sm:$0xff]  ;;  %v1120_v50 = vld [vmem:[%s1141_s0 + $0x8] sm:$0xff]  ;;  %v989_v57 = vld [vmem:[#allocation2 + $0x148] sm:$0xff]  }
  0x20   :  { %888 = vmatprep.subr.bf16.mxu1 %v967_v14  ;;  %v793_v33 = vmul.f32 -1.442695, %v30_v32  ;;  %v794_v52 = vmul.f32 -1.442695, %v1120_v50  ;;  %v988_v59 = vld [vmem:[#allocation2 + $0x180] sm:$0xff]   ;;  %v991_v60 = vld [vmem:[#allocation2 + $0x1c8] sm:$0xff]  }
  0x21   :  { %867 = vmatpush3.bf16.msra.mxu0 %v966_v13  ;;  %v990_v61 = vld [vmem:[#allocation2 + $0x108] sm:$0xff]   ;;  %v993_v62 = vld [vmem:[#allocation2 + $0x150] sm:$0xff]   ;;  %v997_v2 = vld [vmem:[#allocation2 + $0x158] sm:$0xff]  }
  0x22   :  { %868 = vmatprep.subr.bf16.mxu0 %v969_v16  ;;  %1017 = vpow2.f32 %v793_v33  ;;  %v992_v63 = vld [vmem:[#allocation2 + $0x188] sm:$0xff]   ;;  %v995_v0 = vld [vmem:[#allocation2 + $0x1d0] sm:$0xff]   ;;  %v999_v5 = vld [vmem:[#allocation2 + $0x1d8] sm:$0xff]  }
  0x23   :  { %889 = vmatpush3.bf16.msra.mxu1 %v968_v15  ;;  %v994_v1 = vld [vmem:[#allocation2 + $0x110] sm:$0xff]   ;;  %v998_v6 = vld [vmem:[#allocation2 + $0x118] sm:$0xff]   ;;  %v1001_v8 = vld [vmem:[#allocation2 + $0x160] sm:$0xff]  }
  0x24   :  { %890 = vmatprep.subr.bf16.mxu1 %v971_v18  ;;  %v996_v3 = vld [vmem:[#allocation2 + $0x190] sm:$0xff]   ;;  %v1000_v9 = vld [vmem:[#allocation2 + $0x198] sm:$0xff]   ;;  %v1003_v10 = vld [vmem:[#allocation2 + $0x1e0] sm:$0xff]  }
  0x25   :  { %869 = vmatpush3.bf16.msra.mxu0 %v970_v17  ;;  %v1002_v11 = vld [vmem:[#allocation2 + $0x120] sm:$0xff]   ;;  %v1005_v12 = vld [vmem:[#allocation2 + $0x168] sm:$0xff]   ;;  %v1009_v16 = vld [vmem:[#allocation2 + $0x170] sm:$0xff]  }
  0x26   :  { %870 = vmatprep.subr.bf16.mxu0 %v973_v20  ;;  %v1004_v13 = vld [vmem:[#allocation2 + $0x1a0] sm:$0xff]   ;;  %v1007_v14 = vld [vmem:[#allocation2 + $0x1e8] sm:$0xff]   ;;  %v1011_v18 = vld [vmem:[#allocation2 + $0x1f0] sm:$0xff]  }
  0x27   :  { %891 = vmatpush3.bf16.msra.mxu1 %v972_v19  ;;  %v1006_v15 = vld [vmem:[#allocation2 + $0x128] sm:$0xff]   ;;  %v1010_v20 = vld [vmem:[#allocation2 + $0x130] sm:$0xff]  }
  0x28   :  { %892 = vmatprep.subr.bf16.mxu1 %v975_v22  ;;  %v1008_v17 = vld [vmem:[#allocation2 + $0x1a8] sm:$0xff]  }
  0x29   :  { %871 = vmatpush3.bf16.msra.mxu0 %v974_v21  ;;  %v1013_v21 = vld [vmem:[#allocation2 + $0x178] sm:$0xff]  }
  0x2a   :  { %872 = vmatprep.subr.bf16.mxu0 %v977_v24  ;;  %v1015_v24 = vld [vmem:[#allocation2 + $0x1f8] sm:$0xff]  }
  0x2b   :  { %893 = vmatpush3.bf16.msra.mxu1 %v976_v23  ;;  %v1012_v23 = vld [vmem:[#allocation2 + $0x1b0] sm:$0xff]  }
  0x2c   :  { %894 = vmatprep.subr.bf16.mxu1 %v979_v26  ;;  %v1018_v36 = vpop.eup %1017 }
  0x2d   :  { %873 = vmatpush3.bf16.msra.mxu0 %v978_v25  ;;  %v38_v37 = vadd.f32 1.0, %v1018_v36 }
  0x2e   :  { %874 = vmatprep.subr.bf16.mxu0 %v981_v28 }
  0x2f   :  { %895 = vmatpush3.bf16.msra.mxu1 %v980_v27  ;;  %1019 = vrcp.f32 %v38_v37  ;;  %v1014_v27 = vld [vmem:[#allocation2 + $0x138] sm:$0xff]   ;;  %v795_v37 = vld [vmem:[%s1143_s2] ss:$0 sm:$0xff]  ;;  %s784_s2 = sshll.u32 %s1077_s30, 4  ;;  %s785_s2 = int_to_ptr.vmem [resolvable:$true] %s784_s2 }
  0x30   :  { %896 = vmatprep.subr.bf16.mxu1 %v983_v30  ;;  %1021 = vpow2.f32 %v794_v52  ;;  %v1016_v30 = vld [vmem:[#allocation2 + $0x1b8] sm:$0xff]   ;;  %s1047_s4 = scalar_lea.vmem %s785_s2, 32  ;;  %p1052_p9 = scmp.lt.s32.totalorder %s785_s2, %s785_s2 }
  0x31   :  { %875 = vmatpush3.bf16.msra.mxu0 %v982_v29  ;;  %p1048_p8 = scmp.ne.s32.totalorder %s785_s2, %s1047_s4  ;;  %p1053_p10 = scmp.lt.s32.totalorder %s1047_s4, %s1047_s4 }
  0x32   :  { %904 = vmatprep.subr.bf16.mxu0 %v985_v34 }
  0x33   :  { %897 = vmatpush3.bf16.msra.mxu1 %v984_v31  ;;  %p1054_p11 = por %p1053_p10, %p1052_p9 }
  0x34   :  { %926 = vmatprep.subr.bf16.mxu1 %v987_v35 }
  0x35   :  { %p1055_p12 = pnand %p1054_p11, %p1048_p8 }
  0x39   :  { %v1020_v44 = vpop.eup %1019 }
  0x3a   :  { %v44_v45 = vmul.f32 %v1020_v44, %v30_v32  ;;  %v1022_v4 = vpop.eup %1021 }
  0x3b   :  { %v39_v7 = vadd.f32 1.0, %v1022_v4 }
  0x3c   :  { %v55_v46 = vrot.slane %v44_v45, %v1113_v43  ;;  %v48_v47 = vcombine.high %v44_v45, %v44_v45 }
  0x3d   :  { %1023 = vrcp.f32 %v39_v7 }
  0x3e   :  { %v63_v48 = vcombine.high %v55_v46, %v55_v46  ;;  %v62_v49 = vrot.slane %v48_v47, %v1113_v43  ;;  %v90_v51 = vpack.c.bf16 %v55_v46, %v55_v46 }
  0x40   :  { %v91_v53 = vpack.c.bf16 %v63_v48, %v63_v48  ;;  %v64_v55 = vcombine.high %v62_v49, %v62_v49  ;;  %v92_v56 = vpack.c.bf16 %v62_v49, %v62_v49 }
  0x42   :  { %649 = vmatprep.mubr.bf16.mxu0 %v91_v53  ;;  %v93_v58 = vpack.c.bf16 %v64_v55, %v64_v55 }
  0x43   :  { %650 = vmatmul.mubr.bf16.vlgmr.msra.gmra.mrb[0].mxu0 %v90_v51 }
  0x44   :  { %905 = vmatpush3.bf16.msra.mxu0 %v986_v54  ;;  %689 = vmatprep.mubr.bf16.mxu1 %v93_v58 }
  0x45   :  { %690 = vmatmul.mubr.bf16.vlgmr.msra.gmra.mrb[0].mxu1 %v92_v56  ;;  %906 = vmatprep.subr.bf16.mxu0 %v989_v57 }
  0x46   :  { %927 = vmatpush3.bf16.msra.mxu1 %v988_v59 }
  0x47   :  { %928 = vmatprep.subr.bf16.mxu1 %v991_v60  ;;  %v1024_v19 = vpop.eup %1023 }
  0x48   :  { %907 = vmatpush3.bf16.msra.mxu0 %v990_v61  ;;  %v45_v22 = vmul.f32 %v1024_v19, %v1120_v50 }
  0x49   :  { %908 = vmatprep.subr.bf16.mxu0 %v993_v62 }
  0x4a   :  { %929 = vmatpush3.bf16.msra.mxu1 %v992_v63  ;;  %v72_v25 = vrot.slane %v45_v22, %v1113_v43  ;;  %v65_v26 = vcombine.high %v45_v22, %v45_v22 }
  0x4b   :  { %930 = vmatprep.subr.bf16.mxu1 %v995_v0 }
  0x4c   :  { %909 = vmatpush3.bf16.msra.mxu0 %v994_v1  ;;  %v80_v28 = vcombine.high %v72_v25, %v72_v25  ;;  %v79_v29 = vrot.slane %v65_v26, %v1113_v43  ;;  %v94_v32 = vpack.c.bf16 %v72_v25, %v72_v25 }
  0x4d   :  { %910 = vmatprep.subr.bf16.mxu0 %v997_v2 }
  0x4e   :  { %931 = vmatpush3.bf16.msra.mxu1 %v996_v3  ;;  %v95_v31 = vpack.c.bf16 %v80_v28, %v80_v28  ;;  %v81_v33 = vcombine.high %v79_v29, %v79_v29  ;;  %v96_v35 = vpack.c.bf16 %v79_v29, %v79_v29 }
  0x4f   :  { %932 = vmatprep.subr.bf16.mxu1 %v999_v5 }
  0x50   :  { %911 = vmatpush3.bf16.msra.mxu0 %v998_v6  ;;  %729 = vmatprep.mubr.bf16.mxu0 %v95_v31  ;;  %v97_v34 = vpack.c.bf16 %v81_v33, %v81_v33 }
  0x51   :  { %912 = vmatprep.subr.bf16.mxu0 %v1001_v8 }
  0x52   :  { %933 = vmatpush3.bf16.msra.mxu1 %v1000_v9  ;;  %769 = vmatprep.mubr.bf16.mxu1 %v97_v34 }
  0x53   :  { %934 = vmatprep.subr.bf16.mxu1 %v1003_v10 }
  0x54   :  { %913 = vmatpush3.bf16.msra.mxu0 %v1002_v11 }
  0x55   :  { %914 = vmatprep.subr.bf16.mxu0 %v1005_v12 }
  0x56   :  { %935 = vmatpush3.bf16.msra.mxu1 %v1004_v13 }
  0x57   :  { %936 = vmatprep.subr.bf16.mxu1 %v1007_v14 }
  0x58   :  { %915 = vmatpush3.bf16.msra.mxu0 %v1006_v15 }
  0x59   :  { %916 = vmatprep.subr.bf16.mxu0 %v1009_v16 }
  0x5a   :  { %937 = vmatpush3.bf16.msra.mxu1 %v1008_v17 }
  0x5b   :  { %938 = vmatprep.subr.bf16.mxu1 %v1011_v18 }
  0x5c   :  { %917 = vmatpush3.bf16.msra.mxu0 %v1010_v20 }
  0x5d   :  { %918 = vmatprep.subr.bf16.mxu0 %v1013_v21 }
  0x5e   :  { %939 = vmatpush3.bf16.msra.mxu1 %v1012_v23 }
  0x5f   :  { %940 = vmatprep.subr.bf16.mxu1 %v1015_v24 }
  0x60   :  { %919 = vmatpush3.bf16.msra.mxu0 %v1014_v27 }
  0x62   :  { %941 = vmatpush3.bf16.msra.mxu1 %v1016_v30 }
  0x63   :  { %730 = vmatmul.mubr.bf16.vlgmr.msra.gmra.mrb[4].mxu0 %v94_v32 }
  0x65   :  { %770 = vmatmul.mubr.bf16.vlgmr.msra.gmra.mrb[4].mxu1 %v96_v35 }
 0x116   :  { %v876_v36 = vpop.f32.mrb[0].mxu0 }
 0x117   :  { %v877_v38 = vpop.f32.mrb[1].mxu0 }
 0x118   :  { %v878_v39 = vadd.f32 %v877_v38, %v876_v36  ;;  %v879_v40 = vpop.f32.mrb[2].mxu0  ;;  %v898_v41 = vpop.f32.mrb[0].mxu1 }
 0x119   :  { %v880_v42 = vpop.f32.mrb[3].mxu0  ;;  %v899_v43 = vpop.f32.mrb[1].mxu1 }
 0x11a   :  { %v652_v44 = vadd.f32 %v878_v39, %v795_v37  ;;  %v900_v45 = vadd.f32 %v899_v43, %v898_v41  ;;  %v901_v46 = vpop.f32.mrb[2].mxu1 }
 0x11b   :  { %v902_v47 = vpop.f32.mrb[3].mxu1 }
 0x11c   :  { %v692_v48 = vadd.f32 %v900_v45, %v652_v44 }
 0x136   :  { %v920_v49 = vpop.f32.mrb[4].mxu0 }
 0x137   :  { %v921_v50 = vpop.f32.mrb[5].mxu0 }
 0x138   :  { %v922_v51 = vadd.f32 %v921_v50, %v920_v49  ;;  %v923_v52 = vpop.f32.mrb[6].mxu0  ;;  %v942_v53 = vpop.f32.mrb[4].mxu1 }
 0x139   :  { %v924_v54 = vpop.f32.mrb[7].mxu0  ;;  %v943_v55 = vpop.f32.mrb[5].mxu1 }
 0x13a   :  { %v732_v56 = vadd.f32 %v922_v51, %v692_v48  ;;  %v944_v57 = vadd.f32 %v943_v55, %v942_v53  ;;  %v945_v58 = vpop.f32.mrb[6].mxu1 }
 0x13b   :  { %v946_v59 = vpop.f32.mrb[7].mxu1 }
 0x13c   :  { %v772_v60 = vadd.f32 %v944_v57, %v732_v56 }
 0x13e   :  { %777 = vst [vmem:[#allocation5] sm:$0x3] %v772_v60 }
 0x13f   :  { %1058 = shalt.err (!%p1055_p12)
}
 0x140   :  { %s1059_s7 = scalar_lea.hbm %s1144_s3, 32 }
 0x141   :  { %p1060_p13 = scmp.ne.s32.totalorder %s1144_s3, %s1059_s7  ;;  %p1063_p0 = scmp.lt.u32.totalorder %s1059_s7, %s1144_s3 }
 0x143   :  { %p1065_p1 = pnand %p1063_p0, %p1060_p13 }
 0x145   :  { %1068 = shalt.err (!%p1065_p1)
}
 0x146   :  { %787 = dma.vmem_to_hbm [thread:$0]  %s785_s2, 32, %s1144_s3, [#allocation4]  }
 0x147   :  { %1071 = dma.done.wait [#allocation4], 32  }
 0x148   :  { %1072 = vsyncadd [#allocation4], 4294967264 }
 0x149   :  { %791 = vsyncpa [#allocation3], 1 }
 0x14a   :  { %792 = vsyncpa [#allocation4], 1 }

</bundles_post_ra>
